<compile_context>
chip_gen: v6e
topology: v6e:2x2x1
jax: 0.10.0
libtpu: 0.0.40
codegen_flags: <defaults>
</compile_context>

<pallas_src>
import functools

import jax
import jax.numpy as jnp
from jax.experimental import pallas as pl
from jax.experimental.pallas import tpu as pltpu

LANES = 128
MAX_TILE_ROWS = 8192   # (8192,128) f32 block = 4 MiB; 2 inputs x 2 buffers = 16 MiB VMEM
CHUNK_ROWS = 1024      # sub-slab per unrolled inner step (bounds diff/sq temporaries)


def _sq_diff_partial_kernel(img_ref, rec_ref, out_ref, *,
                            tile_rows, chunk_rows, n_red, n_blocks):
    """Accumulate per-(8,128)-vreg partial sums of (img - rec)**2 into out_ref."""
    p = pl.program_id(0)   # parallel group (one per TensorCore on multi-core chips)
    r = pl.program_id(1)   # reduction step within the group

    @pl.when(r == 0)
    def _init():
        out_ref[...] = jnp.zeros_like(out_ref)

    n_chunks = tile_rows // chunk_rows

    def chunk_body(c, acc):
        start = pl.multiple_of(c * chunk_rows, chunk_rows)
        d = (img_ref[pl.ds(start, chunk_rows), :].astype(jnp.float32)
             - rec_ref[pl.ds(start, chunk_rows), :].astype(jnp.float32))
        sq = (d * d).reshape(chunk_rows // 8, 8, LANES)
        return acc + jnp.sum(sq, axis=0)

    partial = jax.lax.fori_loop(0, n_chunks, chunk_body,
                                jnp.zeros((8, LANES), jnp.float32),
                                unroll=True)

    # Blocks past the end (only when n_blocks % n_par != 0) are clamped duplicate
    # reads; don't count their contribution.
    @pl.when(p * n_red + r < n_blocks)
    def _accumulate():
        out_ref[...] += partial


def _parallel_groups():
    """Best-effort (#groups, leading-axis semantics) for splitting across TensorCores."""
    try:
        kind = jax.devices()[0].device_kind.lower()
    except Exception:
        kind = ""
    if ("v7" in kind) or ("7x" in kind):
        # v7x: two TensorCores per chip; only CORE_PARALLEL shards a grid axis across them.
        return 2, getattr(pltpu, "CORE_PARALLEL", pltpu.PARALLEL)
    if ("v4" in kind) or ("v5p" in kind):
        return 2, pltpu.PARALLEL           # megacore
    return 1, pltpu.ARBITRARY              # v5e / v6e: single TensorCore


def margin_loss(images, labels, classes, reconstructions):
    """(margin_loss.sum() + 0.0005 * sum((rec - img)**2)) / batch  — matches the PyTorch module."""
    B = images.shape[0]

    # ---- tiny (B,K) margin term: plain XLA (kept out of the DMA-bound kernel) ----
    classes_f = classes.astype(jnp.float32)
    labels_f = labels.astype(jnp.float32)
    left = jnp.maximum(0.9 - classes_f, 0.0)
    right = jnp.maximum(classes_f - 0.1, 0.0)
    margin = jnp.sum(labels_f * (left * left) + 0.5 * (1.0 - labels_f) * (right * right))

    # ---- summed-MSE reconstruction term: streamed Pallas reduction ----
    img_flat = images.reshape(-1)
    rec_flat = reconstructions.reshape(-1)
    n = img_flat.shape[0]

    itemsize = max(img_flat.dtype.itemsize, rec_flat.dtype.itemsize)
    sub = max(8, 32 // itemsize)          # sublane multiple: 8 f32 / 16 bf16 / 32 int8
    rows = n // LANES                     # full 128-lane rows

    recon = jnp.float32(0.0)
    covered = 0
    if rows >= sub:
        # Tile selection: big blocks, multiple of CHUNK_ROWS when the slab is large.
        if rows >= CHUNK_ROWS:
            n_t = pl.cdiv(rows, MAX_TILE_ROWS)
            tile_rows = max(CHUNK_ROWS, ((rows // n_t) // CHUNK_ROWS) * CHUNK_ROWS)
            chunk_rows = CHUNK_ROWS
        else:
            tile_rows = (rows // sub) * sub
            chunk_rows = tile_rows
        n_blocks = rows // tile_rows
        covered = n_blocks * tile_rows * LANES

        n128 = rows * LANES
        if n128 == n:
            img2d = img_flat.reshape(rows, LANES)      # free bitcast view, no HBM copy
            rec2d = rec_flat.reshape(rows, LANES)
        else:
            # TODO(synk): the n % 128 != 0 case slices the 128-aligned prefix, which may
            # materialize one HBM copy; the aligned fast path above is copy-free.
            img2d = jax.lax.slice(img_flat, (0,), (n128,)).reshape(rows, LANES)
            rec2d = jax.lax.slice(rec_flat, (0,), (n128,)).reshape(rows, LANES)

        n_cores, lead_sem = _parallel_groups()
        n_par = max(1, min(n_cores, n_blocks))
        if n_par == 1:
            lead_sem = pltpu.ARBITRARY
        n_red = pl.cdiv(n_blocks, n_par)

        kernel = functools.partial(
            _sq_diff_partial_kernel,
            tile_rows=tile_rows, chunk_rows=chunk_rows,
            n_red=n_red, n_blocks=n_blocks)

        def stream_idx(p, r):
            return (jnp.minimum(p * n_red + r, n_blocks - 1), 0)

        block_bytes = tile_rows * LANES * (img2d.dtype.itemsize + rec2d.dtype.itemsize)
        vmem_limit = int(min(64 << 20, 2 * block_bytes + (8 << 20)))

        cost = pl.CostEstimate(
            flops=3 * n_blocks * tile_rows * LANES,
            transcendentals=0,
            bytes_accessed=n_blocks * block_bytes + n_par * 8 * LANES * 4)

        partials = pl.pallas_call(
            kernel,
            out_shape=jax.ShapeDtypeStruct((n_par * 8, LANES), jnp.float32),
            grid_spec=pltpu.PrefetchScalarGridSpec(
                num_scalar_prefetch=0,
                grid=(n_par, n_red),
                in_specs=[
                    pl.BlockSpec((tile_rows, LANES), stream_idx),   # images stream
                    pl.BlockSpec((tile_rows, LANES), stream_idx),   # reconstructions stream
                ],
                out_specs=pl.BlockSpec((8, LANES), lambda p, r: (p, 0)),
            ),
            compiler_params=pltpu.CompilerParams(
                dimension_semantics=(lead_sem, pltpu.ARBITRARY),
                vmem_limit_bytes=vmem_limit),
            cost_estimate=cost,
        )(img2d, rec2d)

        recon = recon + jnp.sum(partials)

    # Ragged remainder (uncovered rows + sub-128 lane tail): tiny fused XLA reduction
    # reading straight from the original buffers — no padded copies anywhere.
    if covered < n:
        it = jax.lax.slice(img_flat, (covered,), (n,)).astype(jnp.float32)
        rt = jax.lax.slice(rec_flat, (covered,), (n,)).astype(jnp.float32)
        d = it - rt
        recon = recon + jnp.sum(d * d)

    return (margin + 0.0005 * recon) / B


def _reference(images, labels, classes, reconstructions):
    B = images.shape[0]
    left = jnp.maximum(0.9 - classes, 0.0) ** 2
    right = jnp.maximum(classes - 0.1, 0.0) ** 2
    margin = jnp.sum(labels * left + 0.5 * (1.0 - labels) * right)
    recon = jnp.sum((reconstructions.reshape(B, -1) - images.reshape(B, -1)) ** 2)
    return (margin + 0.0005 * recon) / B


if __name__ == "__main__":
    key = jax.random.PRNGKey(0)
    k1, k2, k3, k4 = jax.random.split(key, 4)

    B, C, H, W = 2, 4, 16, 16
    K = 10  # number of classes

    images = jax.random.uniform(k1, (B, C, H, W), dtype=jnp.float32)
    reconstructions = jax.random.uniform(k2, (B, C, H, W), dtype=jnp.float32)
    classes = jax.random.uniform(k3, (B, K), dtype=jnp.float32)   # capsule lengths in [0,1]
    label_idx = jax.random.randint(k4, (B,), 0, K)
    labels = jax.nn.one_hot(label_idx, K, dtype=jnp.float32)

    out = margin_loss(images, labels, classes, reconstructions)
    out = jax.block_until_ready(out)

    ref = _reference(images, labels, classes, reconstructions)
    assert jnp.allclose(out, ref, rtol=1e-5, atol=1e-5), (out, ref)

    print("KERNEL_OK")
</pallas_src>

<mosaic_0001>
module attributes {stable_mosaic.version = 11 : i64} {
  func.func @_sq_diff_partial_kernel(%arg0: i32, %arg1: i32, %arg2: memref<16x128xf32, #tpu.memory_space<vmem>>, %arg3: memref<16x128xf32, #tpu.memory_space<vmem>>, %arg4: memref<8x128xf32, #tpu.memory_space<vmem>>) attributes {dimension_semantics = [#tpu.dimension_semantics<arbitrary>, #tpu.dimension_semantics<arbitrary>], iteration_bounds = array<i64: 1, 1>, scalar_prefetch = 0 : i64, scratch_operands = 0 : i64, tpu.core_type = #tpu.core_type<tc>, window_params = [{transform_indices = @transform_0, window_bounds = array<i64: 16, 128>}, {transform_indices = @transform_1, window_bounds = array<i64: 16, 128>}, {transform_indices = @transform_2, window_bounds = array<i64: 8, 128>}]} {
    %c0_i32 = arith.constant 0 : i32
    %0 = arith.cmpi eq, %arg1, %c0_i32 : i32
    %1 = arith.extui %0 : i1 to i32
    %c0_i32_0 = arith.constant 0 : i32
    %2 = arith.cmpi ne, %1, %c0_i32_0 : i32
    scf.if %2 {
      %cst_7 = arith.constant 0.000000e+00 : f32
      %20 = vector.broadcast %cst_7 : f32 to vector<8x128xf32>
      %c0_8 = arith.constant 0 : index
      %c0_9 = arith.constant 0 : index
      %21 = vector.load %arg4[%c0_8, %c0_9] : memref<8x128xf32, #tpu.memory_space<vmem>>, vector<8x128xf32>
      tpu.vector_store %arg4[%c0_8, %c0_9], %20 {strides = array<i32>} : memref<8x128xf32, #tpu.memory_space<vmem>>, vector<8x128xf32>,
    } else {
    }
    %cst = arith.constant 0.000000e+00 : f32
    %3 = vector.broadcast %cst : f32 to vector<8x128xf32>
    %c0_i32_1 = arith.constant 0 : i32
    %c16_i32 = arith.constant 16 : i32
    %4 = arith.muli %c0_i32_1, %c16_i32 : i32
    %5 = tpu.assume_multiple %4, 16 : i32
    %6 = arith.index_cast %5 : i32 to index
    %c0 = arith.constant 0 : index
    %7 = vector.load %arg2[%6, %c0] : memref<16x128xf32, #tpu.memory_space<vmem>>, vector<16x128xf32>
    %8 = arith.index_cast %5 : i32 to index
    %c0_2 = arith.constant 0 : index
    %9 = vector.load %arg3[%8, %c0_2] : memref<16x128xf32, #tpu.memory_space<vmem>>, vector<16x128xf32>
    %10 = arith.subf %7, %9 : vector<16x128xf32>
    %11 = arith.mulf %10, %10 : vector<16x128xf32>
    %12 = vector.shape_cast %11 : vector<16x128xf32> to vector<2x8x128xf32>
    %cst_3 = arith.constant dense<0.000000e+00> : vector<8x128xf32>
    %13 = vector.multi_reduction <add>, %12, %cst_3 [0] : vector<2x8x128xf32> to vector<8x128xf32>
    %14 = arith.addf %3, %13 : vector<8x128xf32>
    %c1_i32 = arith.constant 1 : i32
    %c1_i32_4 = arith.constant 1 : i32
    %15 = arith.muli %arg0, %c1_i32_4 : i32
    %16 = arith.addi %15, %arg1 : i32
    %c1_i32_5 = arith.constant 1 : i32
    %17 = arith.cmpi slt, %16, %c1_i32_5 : i32
    %18 = arith.extui %17 : i1 to i32
    %c0_i32_6 = arith.constant 0 : i32
    %19 = arith.cmpi ne, %18, %c0_i32_6 : i32
    scf.if %19 {
      %c0_7 = arith.constant 0 : index
      %c0_8 = arith.constant 0 : index
      %20 = vector.load %arg4[%c0_7, %c0_8] : memref<8x128xf32, #tpu.memory_space<vmem>>, vector<8x128xf32>
      %21 = arith.addf %20, %14 : vector<8x128xf32>
      %c0_9 = arith.constant 0 : index
      %c0_10 = arith.constant 0 : index
      %22 = vector.load %arg4[%c0_9, %c0_10] : memref<8x128xf32, #tpu.memory_space<vmem>>, vector<8x128xf32>
      tpu.vector_store %arg4[%c0_9, %c0_10], %21 {strides = array<i32>} : memref<8x128xf32, #tpu.memory_space<vmem>>, vector<8x128xf32>,
    } else {
    }
    return
  }
  func.func @transform_0(%arg0: i32, %arg1: i32) -> (i32, i32) {
    %c1_i32 = arith.constant 1 : i32
    %0 = arith.muli %arg0, %c1_i32 : i32
    %1 = arith.addi %0, %arg1 : i32
    %c0_i32 = arith.constant 0 : i32
    %2 = arith.minsi %1, %c0_i32 : i32
    %c0_i32_0 = arith.constant 0 : i32
    %c0_i32_1 = arith.constant 0 : i32
    return %2, %c0_i32_0 : i32, i32
  }
  func.func @transform_1(%arg0: i32, %arg1: i32) -> (i32, i32) {
    %c1_i32 = arith.constant 1 : i32
    %0 = arith.muli %arg0, %c1_i32 : i32
    %1 = arith.addi %0, %arg1 : i32
    %c0_i32 = arith.constant 0 : i32
    %2 = arith.minsi %1, %c0_i32 : i32
    %c0_i32_0 = arith.constant 0 : i32
    %c0_i32_1 = arith.constant 0 : i32
    return %2, %c0_i32_0 : i32, i32
  }
  func.func @transform_2(%arg0: i32, %arg1: i32) -> (i32, i32) {
    %c0_i32 = arith.constant 0 : i32
    %c0_i32_0 = arith.constant 0 : i32
    return %arg0, %c0_i32 : i32, i32
  }
}

</mosaic_0001>

<bundles_post_ra>
// kernel: tpu_custom_call.1
= control target key start
LH: loop header
LB: loop body
LE: loop exit
PB: predicated region body
PF: predicated region fallthrough
CT: control target
= control target key end

     0   :  { %7 = vsyncpa [#allocation3], 0  ;;  %s204_s0 = inlined_call_operand.hbm [shape: f32[16,128], index: 0, kind: input, shape index: {}]   ;;  %s205_s1 = inlined_call_operand.hbm [shape: f32[16,128], index: 1, kind: input, shape index: {}]   ;;  %s206_s2 = inlined_call_operand.hbm [shape: f32[8,128], index: 2, kind: output, shape index: {}]  }
   0x1   :  { %8 = vsyncpa [#allocation6], 0 }
   0x2   :  { %9 = vsyncpa [#allocation4], 0  ;;  %s175_s9 = smov [#allocation2]  }
   0x3   :  { %s21_s10 = sshll.u32 %s175_s9, 4  ;;  %s22_s10 = int_to_ptr.vmem [resolvable:$true] %s21_s10 }
   0x4   :  { %s117_s11 = scalar_lea.vmem %s22_s10, 256  ;;  %p122_p1 = scmp.lt.s32.totalorder %s22_s10, %s22_s10 }
   0x5   :  { %p118_p0 = scmp.ne.s32.totalorder %s22_s10, %s117_s11  ;;  %p123_p2 = scmp.lt.s32.totalorder %s117_s11, %s117_s11 }
   0x7   :  { %p124_p3 = por %p123_p2, %p122_p1 }
   0x9   :  { %p125_p4 = pnand %p124_p3, %p118_p0 }
   0xb   :  { %128 = shalt.err (!%p125_p4)
}
   0xc   :  { %s176_s12 = smov 128   ;;  %s177_s13 = smov 8  }
   0xd   :  { %27 = dma.hbm_to_vmem [thread:$0]  %s204_s0, 256, %s22_s10, [#allocation3], %s176_s12, %s176_s12, %s177_s13  }
   0xe   :  { %s178_s16 = smov [#allocation5]  }
   0xf   :  { %s39_s17 = sshll.u32 %s178_s16, 4  ;;  %s40_s17 = int_to_ptr.vmem [resolvable:$true] %s39_s17 }
  0x10   :  { %s137_s18 = scalar_lea.vmem %s40_s17, 256  ;;  %p142_p6 = scmp.lt.s32.totalorder %s40_s17, %s40_s17 }
  0x11   :  { %p138_p5 = scmp.ne.s32.totalorder %s40_s17, %s137_s18  ;;  %p143_p7 = scmp.lt.s32.totalorder %s137_s18, %s137_s18 }
  0x13   :  { %p144_p8 = por %p143_p7, %p142_p6 }
  0x15   :  { %p145_p9 = pnand %p144_p8, %p138_p5 }
  0x17   :  { %148 = shalt.err (!%p145_p9)
}
  0x18   :  { %45 = dma.hbm_to_vmem [thread:$0]  %s205_s1, 256, %s40_s17, [#allocation6], %s176_s12, %s176_s12, %s177_s13  }
  0x19   :  { %169 = dma.done.wait [#allocation3], 256  }
  0x1a   :  { %170 = vsyncadd [#allocation3], 4294967040 }
  0x1b   :  { %171 = dma.done.wait [#allocation6], 256  }
  0x1c   :  { %172 = vsyncadd [#allocation6], 4294967040  ;;  %v65_v0 = vld [vmem:[#allocation2] sm:$0xff]  ;;  %v66_v1 = vld [vmem:[#allocation2 + $0x8] sm:$0xff]  ;;  %s179_s0 = smov [#allocation7]  }
  0x1d   :  { %v67_v2 = vld [vmem:[#allocation5] sm:$0xff]  ;;  %v68_v3 = vld [vmem:[#allocation5 + $0x8] sm:$0xff]  ;;  %s89_s21 = sshll.u32 %s179_s0, 4  ;;  %s90_s21 = int_to_ptr.vmem [resolvable:$true] %s89_s21 }
  0x1e   :  { %v69_v4 = vsub.f32 %v65_v0, %v67_v2  ;;  %v70_v5 = vsub.f32 %v66_v1, %v68_v3  ;;  %s149_s22 = scalar_lea.vmem %s90_s21, 128  ;;  %p154_p11 = scmp.lt.s32.totalorder %s90_s21, %s90_s21 }
  0x1f   :  { %p150_p10 = scmp.ne.s32.totalorder %s90_s21, %s149_s22  ;;  %p155_p12 = scmp.lt.s32.totalorder %s149_s22, %s149_s22 }
  0x20   :  { %v71_v6 = vmul.f32 %v69_v4, %v69_v4  ;;  %v72_v7 = vmul.f32 %v70_v5, %v70_v5 }
  0x21   :  { %p156_p13 = por %p155_p12, %p154_p11 }
  0x22   :  { %v73_v8 = vadd.f32 %v72_v7, %v71_v6 }
  0x23   :  { %p157_p0 = pnand %p156_p13, %p150_p10 }
  0x24   :  { %82 = vst [vmem:[#allocation7] sm:$0xff] %v73_v8 }
  0x25   :  { %160 = shalt.err (!%p157_p0)
}
  0x26   :  { %92 = dma.vmem_to_hbm [thread:$0]  %s90_s21, 128, %s206_s2, [#allocation4]  }
  0x27   :  { %173 = dma.done.wait [#allocation4], 128  }
  0x28   :  { %174 = vsyncadd [#allocation4], 4294967168 }
  0x29   :  { %96 = vsyncpa [#allocation3], 1 }
  0x2a   :  { %97 = vsyncpa [#allocation6], 1 }
  0x2b   :  { %98 = vsyncpa [#allocation4], 1 }

</bundles_post_ra>
